<compile_context>
chip_gen: v5e
topology: v5e:2x2
jax: 0.10.0
libtpu: 0.0.40
codegen_flags: <defaults>
</compile_context>

<pallas_src>
import functools
import math

import numpy as np
import jax
import jax.numpy as jnp
from jax import lax
from jax.experimental import pallas as pl
from jax.experimental.pallas import tpu as pltpu

WINDOW_SIZE = 11
SIGMA = 0.5
PAD = WINDOW_SIZE // 2

# Deterministic Gaussian window (same as gaussian(11, 0.5) in the module).
_g = [math.exp(-((x - WINDOW_SIZE // 2) ** 2) / (2.0 * SIGMA ** 2))
      for x in range(WINDOW_SIZE)]
_gsum = sum(_g)
GAUSS_1D = np.asarray([v / _gsum for v in _g], dtype=np.float32)

C1 = (0.01 * 1.0) ** 2
C2 = (0.03 * 1.0) ** 2


def _band_matrix(n):
    """(n, n) banded matrix B with B[i, j] = gauss[i - j + PAD] for |i-j| <= PAD.

    `x @ B` (or `B @ x`) applies the 1-D Gaussian along that axis with implicit
    zero padding (the band is clipped at the edges), exactly matching
    F.conv2d(..., padding=PAD) boundary behaviour.
    """
    idx = np.arange(n)
    d = idx[:, None] - idx[None, :]
    tap = GAUSS_1D[np.clip(d + PAD, 0, WINDOW_SIZE - 1)]
    return np.where(np.abs(d) <= PAD, tap, 0.0).astype(np.float32)


def _choose_groups(n_img, H, W, max_lanes=512, max_sublanes=256):
    """Pick (g_h, g_w): images stacked down sublanes / packed along lanes."""
    def divisors(n):
        return [d for d in range(1, n + 1) if n % d == 0]

    # Lane grouping: only needed when W itself is lane-sparse (< 128).
    if W >= 128:
        g_w = 1
    else:
        divs = divisors(n_img)
        aligned = [d for d in divs if d * W <= max_lanes and (d * W) % 128 == 0]
        fitting = [d for d in divs if d * W <= max_lanes]
        g_w = max(aligned) if aligned else (max(fitting) if fitting else 1)

    rem = n_img // g_w

    # Sublane grouping: raise the matmul M/K dims toward MXU-filling sizes,
    # prefer (g_h*H) % 8 == 0 (tile-aligned slab slices / block shapes) and,
    # when there is enough work, keep >= 2 grid steps (v7x has 2 TensorCores).
    divs_h = [d for d in divisors(rem) if d * H <= max_sublanes] or [1]
    aligned_h = [d for d in divs_h if (d * H) % 8 == 0] or divs_h
    g_h = max(aligned_h)
    if rem // g_h == 1 and rem > 1:
        multi = [d for d in aligned_h if rem // d >= 2 and d * H >= 128]
        if multi:
            g_h = max(multi)
    # BlockSpec legality: a non-full-extent sublane block must be 8-aligned.
    if (g_h * H) % 8 != 0 and rem // g_h > 1:
        g_h = rem  # single step, block covers the full sublane extent
    return g_h, g_w


def _const_spec(shape):
    """Constant-block input spec; single-buffered when the runtime supports it."""
    idx = lambda i: (0, 0)
    if hasattr(pl, "Buffered"):
        try:
            return pl.BlockSpec(shape, idx, pipeline_mode=pl.Buffered(1))
        except TypeError:
            pass
    return pl.BlockSpec(shape, idx)


def _repack(img, steps, g_h, g_w, H, W):
    """NCHW -> (steps*g_h*H, g_w*W) slab. Pure reshape when g_w == 1."""
    n_img = steps * g_h * g_w
    x = img.astype(jnp.float32).reshape(n_img, H, W)
    if g_w == 1:
        return x.reshape(n_img * H, W)          # no data movement
    x = x.reshape(steps * g_h, g_w, H, W)
    x = jnp.transpose(x, (0, 2, 1, 3))          # one HBM pass (only if W < 128)
    return x.reshape(steps * g_h * H, g_w * W)


def _ssim_kernel(ah_ref, bw_ref, x1_ref, x2_ref, out_ref, slab_ref, *, SH):
    """One grid step: a (SH, L) block of packed images for both inputs.

    ah_ref  : (SH, SH)  block-diagonal banded Gaussian, H direction (constant)
    bw_ref  : (L, L)    block-diagonal banded Gaussian, W direction (constant)
    x1_ref  : (SH, L)   packed img1 block
    x2_ref  : (SH, L)   packed img2 block
    out_ref : (8, L)    row 0 = per-column partial sums of the SSIM map
    slab_ref: (5*SH, L) VMEM scratch holding the five filter inputs
    """
    x1 = x1_ref[...]
    x2 = x2_ref[...]

    # Five quantities sharing the Gaussian filter, written straight into the
    # scratch slab (no concat temporaries; SH is 8-aligned -> cheap slices).
    slab_ref[0 * SH:1 * SH, :] = x1
    slab_ref[1 * SH:2 * SH, :] = x2
    slab_ref[2 * SH:3 * SH, :] = x1 * x1
    slab_ref[3 * SH:4 * SH, :] = x2 * x2
    slab_ref[4 * SH:5 * SH, :] = x1 * x2

    # Separable Gaussian conv (zero padding encoded in the bands) on the MXU.
    tw = jnp.dot(slab_ref[...], bw_ref[...], preferred_element_type=jnp.float32)
    ah = ah_ref[...]
    mu1 = jnp.dot(ah, tw[0 * SH:1 * SH], preferred_element_type=jnp.float32)
    mu2 = jnp.dot(ah, tw[1 * SH:2 * SH], preferred_element_type=jnp.float32)
    e11 = jnp.dot(ah, tw[2 * SH:3 * SH], preferred_element_type=jnp.float32)
    e22 = jnp.dot(ah, tw[3 * SH:4 * SH], preferred_element_type=jnp.float32)
    e12 = jnp.dot(ah, tw[4 * SH:5 * SH], preferred_element_type=jnp.float32)

    mu1_sq = mu1 * mu1
    mu2_sq = mu2 * mu2
    mu1_mu2 = mu1 * mu2
    sigma1_sq = e11 - mu1_sq
    sigma2_sq = e22 - mu2_sq
    sigma12 = e12 - mu1_mu2

    ssim_map = ((2.0 * mu1_mu2 + C1) * (2.0 * sigma12 + C2)
                / ((mu1_sq + mu2_sq + C1) * (sigma1_sq + sigma2_sq + C2)))

    # Sublane-only reduce; lane-dense (8, L) store keeps the grid "parallel".
    col = jnp.sum(ssim_map, axis=0, keepdims=True)            # (1, L)
    row = lax.broadcasted_iota(jnp.int32, out_ref.shape, 0)   # (8, L)
    out_ref[...] = jnp.where(row == 0, col, 0.0)


@jax.jit
def ssim_pallas(img1, img2):
    """img1, img2: (B, C, H, W) float32 (NCHW, as in PyTorch). Returns scalar."""
    B, C, H, W = img1.shape
    n_img = B * C
    g_h, g_w = _choose_groups(n_img, H, W)
    SH = g_h * H
    L = g_w * W
    steps = n_img // (g_h * g_w)

    x1 = _repack(img1, steps, g_h, g_w, H, W)   # (steps*SH, L)
    x2 = _repack(img2, steps, g_h, g_w, H, W)

    # Compile-time block-diagonal banded Gaussian matrices (absorb the padding).
    ah = jnp.asarray(np.kron(np.eye(g_h, dtype=np.float32), _band_matrix(H)))  # (SH, SH)
    bw = jnp.asarray(np.kron(np.eye(g_w, dtype=np.float32), _band_matrix(W)))  # (L, L)

    kernel = functools.partial(_ssim_kernel, SH=SH)

    partial_sums = pl.pallas_call(
        kernel,
        out_shape=jax.ShapeDtypeStruct((steps * 8, L), jnp.float32),
        grid_spec=pltpu.PrefetchScalarGridSpec(
            num_scalar_prefetch=0,
            grid=(steps,),
            in_specs=[
                _const_spec((SH, SH)),                     # AH (constant block)
                _const_spec((L, L)),                       # BW (constant block)
                pl.BlockSpec((SH, L), lambda i: (i, 0)),   # img1 block i
                pl.BlockSpec((SH, L), lambda i: (i, 0)),   # img2 block i
            ],
            out_specs=pl.BlockSpec((8, L), lambda i: (i, 0)),
            scratch_shapes=[pltpu.VMEM((5 * SH, L), jnp.float32)],
        ),
        compiler_params=pltpu.CompilerParams(
            dimension_semantics=("parallel",),             # no cross-step state
            vmem_limit_bytes=32 * 1024 * 1024,             # safe on v5e..v7x
        ),
    )(ah, bw, x1, x2)

    # Final reduction (mean over the whole SSIM map) in the wrapper.
    return jnp.sum(partial_sums) / jnp.float32(n_img * H * W)


def _ssim_reference(img1, img2):
    """Pure-JAX reference (mirrors F.conv2d depthwise path) for validation."""
    B, C, H, W = img1.shape
    g = jnp.asarray(GAUSS_1D)
    win2d = jnp.outer(g, g)
    win = jnp.broadcast_to(win2d, (C, 1, WINDOW_SIZE, WINDOW_SIZE))

    def dwconv(x):
        return lax.conv_general_dilated(
            x, win, window_strides=(1, 1),
            padding=[(PAD, PAD), (PAD, PAD)],
            dimension_numbers=("NCHW", "OIHW", "NCHW"),
            feature_group_count=C)

    mu1 = dwconv(img1)
    mu2 = dwconv(img2)
    mu1_sq, mu2_sq, mu1_mu2 = mu1 * mu1, mu2 * mu2, mu1 * mu2
    sigma1_sq = dwconv(img1 * img1) - mu1_sq
    sigma2_sq = dwconv(img2 * img2) - mu2_sq
    sigma12 = dwconv(img1 * img2) - mu1_mu2
    ssim_map = ((2 * mu1_mu2 + C1) * (2 * sigma12 + C2) /
                ((mu1_sq + mu2_sq + C1) * (sigma1_sq + sigma2_sq + C2)))
    return jnp.mean(ssim_map)


if __name__ == "__main__":
    key = jax.random.PRNGKey(0)
    k1, k2 = jax.random.split(key)
    B, Cc, H, W = 2, 4, 16, 16
    img1 = jax.random.uniform(k1, (B, Cc, H, W), dtype=jnp.float32)
    img2 = jax.random.uniform(k2, (B, Cc, H, W), dtype=jnp.float32)

    out = jax.block_until_ready(ssim_pallas(img1, img2))
    ref = jax.block_until_ready(_ssim_reference(img1, img2))
    assert jnp.allclose(out, ref, rtol=1e-3, atol=1e-3), (out, ref)

    print("KERNEL_OK")
</pallas_src>

<mosaic_0001>
module attributes {stable_mosaic.version = 11 : i64} {
  func.func @_ssim_kernel(%arg0: i32, %arg1: memref<16x16xf32, #tpu.memory_space<vmem>>, %arg2: memref<128x128xf32, #tpu.memory_space<vmem>>, %arg3: memref<16x128xf32, #tpu.memory_space<vmem>>, %arg4: memref<16x128xf32, #tpu.memory_space<vmem>>, %arg5: memref<8x128xf32, #tpu.memory_space<vmem>>, %arg6: memref<80x128xf32, #tpu.memory_space<vmem>>) attributes {dimension_semantics = [#tpu.dimension_semantics<parallel>], iteration_bounds = array<i64: 1>, scalar_prefetch = 0 : i64, scratch_operands = 1 : i64, tpu.core_type = #tpu.core_type<tc>, window_params = [{pipeline_mode = #tpu.pipeline_mode<synchronous>, transform_indices = @transform_0, window_bounds = array<i64: 16, 16>}, {pipeline_mode = #tpu.pipeline_mode<synchronous>, transform_indices = @transform_1, window_bounds = array<i64: 128, 128>}, {transform_indices = @transform_2, window_bounds = array<i64: 16, 128>}, {transform_indices = @transform_3, window_bounds = array<i64: 16, 128>}, {transform_indices = @transform_4, window_bounds = array<i64: 8, 128>}]} {
    %c0 = arith.constant 0 : index
    %c0_0 = arith.constant 0 : index
    %0 = vector.load %arg3[%c0, %c0_0] : memref<16x128xf32, #tpu.memory_space<vmem>>, vector<16x128xf32>
    %c0_1 = arith.constant 0 : index
    %c0_2 = arith.constant 0 : index
    %1 = vector.load %arg4[%c0_1, %c0_2] : memref<16x128xf32, #tpu.memory_space<vmem>>, vector<16x128xf32>
    %c0_3 = arith.constant 0 : index
    %c0_4 = arith.constant 0 : index
    %2 = vector.load %arg6[%c0_3, %c0_4] : memref<80x128xf32, #tpu.memory_space<vmem>>, vector<16x128xf32>
    tpu.vector_store %arg6[%c0_3, %c0_4], %0 {strides = array<i32>} : memref<80x128xf32, #tpu.memory_space<vmem>>, vector<16x128xf32>,
    %c16 = arith.constant 16 : index
    %c0_5 = arith.constant 0 : index
    %3 = vector.load %arg6[%c16, %c0_5] : memref<80x128xf32, #tpu.memory_space<vmem>>, vector<16x128xf32>
    tpu.vector_store %arg6[%c16, %c0_5], %1 {strides = array<i32>} : memref<80x128xf32, #tpu.memory_space<vmem>>, vector<16x128xf32>,
    %4 = arith.mulf %0, %0 : vector<16x128xf32>
    %c32 = arith.constant 32 : index
    %c0_6 = arith.constant 0 : index
    %5 = vector.load %arg6[%c32, %c0_6] : memref<80x128xf32, #tpu.memory_space<vmem>>, vector<16x128xf32>
    tpu.vector_store %arg6[%c32, %c0_6], %4 {strides = array<i32>} : memref<80x128xf32, #tpu.memory_space<vmem>>, vector<16x128xf32>,
    %6 = arith.mulf %1, %1 : vector<16x128xf32>
    %c48 = arith.constant 48 : index
    %c0_7 = arith.constant 0 : index
    %7 = vector.load %arg6[%c48, %c0_7] : memref<80x128xf32, #tpu.memory_space<vmem>>, vector<16x128xf32>
    tpu.vector_store %arg6[%c48, %c0_7], %6 {strides = array<i32>} : memref<80x128xf32, #tpu.memory_space<vmem>>, vector<16x128xf32>,
    %8 = arith.mulf %0, %1 : vector<16x128xf32>
    %c64 = arith.constant 64 : index
    %c0_8 = arith.constant 0 : index
    %9 = vector.load %arg6[%c64, %c0_8] : memref<80x128xf32, #tpu.memory_space<vmem>>, vector<16x128xf32>
    tpu.vector_store %arg6[%c64, %c0_8], %8 {strides = array<i32>} : memref<80x128xf32, #tpu.memory_space<vmem>>, vector<16x128xf32>,
    %c0_9 = arith.constant 0 : index
    %c0_10 = arith.constant 0 : index
    %10 = vector.load %arg6[%c0_9, %c0_10] : memref<80x128xf32, #tpu.memory_space<vmem>>, vector<80x128xf32>
    %c0_11 = arith.constant 0 : index
    %c0_12 = arith.constant 0 : index
    %11 = vector.load %arg2[%c0_11, %c0_12] : memref<128x128xf32, #tpu.memory_space<vmem>>, vector<128x128xf32>
    %cst = arith.constant dense<0.000000e+00> : vector<80x128xf32>
    %12 = tpu.matmul %10, %11, %cst {dimension_numbers = #tpu.dot_dimension_numbers<[1], [0], [0], [1], [0, 0, 1, 1], [], []>} : vector<80x128xf32>, vector<128x128xf32>, vector<80x128xf32> -> vector<80x128xf32>
    %c0_13 = arith.constant 0 : index
    %c0_14 = arith.constant 0 : index
    %13 = vector.load %arg1[%c0_13, %c0_14] : memref<16x16xf32, #tpu.memory_space<vmem>>, vector<16x16xf32>
    %14 = vector.extract_strided_slice %12 {offsets = [0, 0], sizes = [16, 128], strides = [1, 1]} : vector<80x128xf32> to vector<16x128xf32>
    %cst_15 = arith.constant dense<0.000000e+00> : vector<16x128xf32>
    %15 = tpu.matmul %13, %14, %cst_15 {dimension_numbers = #tpu.dot_dimension_numbers<[1], [0], [0], [1], [0, 0, 1, 1], [], []>} : vector<16x16xf32>, vector<16x128xf32>, vector<16x128xf32> -> vector<16x128xf32>
    %16 = vector.extract_strided_slice %12 {offsets = [16, 0], sizes = [16, 128], strides = [1, 1]} : vector<80x128xf32> to vector<16x128xf32>
    %cst_16 = arith.constant dense<0.000000e+00> : vector<16x128xf32>
    %17 = tpu.matmul %13, %16, %cst_16 {dimension_numbers = #tpu.dot_dimension_numbers<[1], [0], [0], [1], [0, 0, 1, 1], [], []>} : vector<16x16xf32>, vector<16x128xf32>, vector<16x128xf32> -> vector<16x128xf32>
    %18 = vector.extract_strided_slice %12 {offsets = [32, 0], sizes = [16, 128], strides = [1, 1]} : vector<80x128xf32> to vector<16x128xf32>
    %cst_17 = arith.constant dense<0.000000e+00> : vector<16x128xf32>
    %19 = tpu.matmul %13, %18, %cst_17 {dimension_numbers = #tpu.dot_dimension_numbers<[1], [0], [0], [1], [0, 0, 1, 1], [], []>} : vector<16x16xf32>, vector<16x128xf32>, vector<16x128xf32> -> vector<16x128xf32>
    %20 = vector.extract_strided_slice %12 {offsets = [48, 0], sizes = [16, 128], strides = [1, 1]} : vector<80x128xf32> to vector<16x128xf32>
    %cst_18 = arith.constant dense<0.000000e+00> : vector<16x128xf32>
    %21 = tpu.matmul %13, %20, %cst_18 {dimension_numbers = #tpu.dot_dimension_numbers<[1], [0], [0], [1], [0, 0, 1, 1], [], []>} : vector<16x16xf32>, vector<16x128xf32>, vector<16x128xf32> -> vector<16x128xf32>
    %22 = vector.extract_strided_slice %12 {offsets = [64, 0], sizes = [16, 128], strides = [1, 1]} : vector<80x128xf32> to vector<16x128xf32>
    %cst_19 = arith.constant dense<0.000000e+00> : vector<16x128xf32>
    %23 = tpu.matmul %13, %22, %cst_19 {dimension_numbers = #tpu.dot_dimension_numbers<[1], [0], [0], [1], [0, 0, 1, 1], [], []>} : vector<16x16xf32>, vector<16x128xf32>, vector<16x128xf32> -> vector<16x128xf32>
    %24 = arith.mulf %15, %15 : vector<16x128xf32>
    %25 = arith.mulf %17, %17 : vector<16x128xf32>
    %26 = arith.mulf %15, %17 : vector<16x128xf32>
    %27 = arith.subf %19, %24 : vector<16x128xf32>
    %28 = arith.subf %21, %25 : vector<16x128xf32>
    %29 = arith.subf %23, %26 : vector<16x128xf32>
    %cst_20 = arith.constant 2.000000e+00 : f32
    %30 = vector.broadcast %cst_20 : f32 to vector<16x128xf32>
    %31 = arith.mulf %30, %26 : vector<16x128xf32>
    %cst_21 = arith.constant 9.99999974E-5 : f32
    %32 = vector.broadcast %cst_21 : f32 to vector<16x128xf32>
    %33 = arith.addf %31, %32 : vector<16x128xf32>
    %cst_22 = arith.constant 2.000000e+00 : f32
    %34 = vector.broadcast %cst_22 : f32 to vector<16x128xf32>
    %35 = arith.mulf %34, %29 : vector<16x128xf32>
    %cst_23 = arith.constant 8.99999984E-4 : f32
    %36 = vector.broadcast %cst_23 : f32 to vector<16x128xf32>
    %37 = arith.addf %35, %36 : vector<16x128xf32>
    %38 = arith.mulf %33, %37 : vector<16x128xf32>
    %39 = arith.addf %24, %25 : vector<16x128xf32>
    %cst_24 = arith.constant 9.99999974E-5 : f32
    %40 = vector.broadcast %cst_24 : f32 to vector<16x128xf32>
    %41 = arith.addf %39, %40 : vector<16x128xf32>
    %42 = arith.addf %27, %28 : vector<16x128xf32>
    %cst_25 = arith.constant 8.99999984E-4 : f32
    %43 = vector.broadcast %cst_25 : f32 to vector<16x128xf32>
    %44 = arith.addf %42, %43 : vector<16x128xf32>
    %45 = arith.mulf %41, %44 : vector<16x128xf32>
    %46 = arith.divf %38, %45 : vector<16x128xf32>
    %cst_26 = arith.constant dense<0.000000e+00> : vector<128xf32>
    %47 = vector.multi_reduction <add>, %46, %cst_26 [0] : vector<16x128xf32> to vector<128xf32>
    %48 = vector.shape_cast %47 : vector<128xf32> to vector<1x128xf32>
    %49 = tpu.iota {dimensions = array<i32: 0>} : vector<8x128xi32>
    %c0_i32 = arith.constant 0 : i32
    %50 = vector.broadcast %c0_i32 : i32 to vector<8x128xi32>
    %51 = arith.cmpi eq, %49, %50 : vector<8x128xi32>
    %cst_27 = arith.constant 0.000000e+00 : f32
    %52 = vector.shape_cast %48 : vector<1x128xf32> to vector<1x128xf32>
    %53 = vector.broadcast %52 : vector<1x128xf32> to vector<8x128xf32>
    %54 = vector.broadcast %cst_27 : f32 to vector<8x128xf32>
    %55 = arith.select %51, %53, %54 : vector<8x128xi1>, vector<8x128xf32>
    %c0_28 = arith.constant 0 : index
    %c0_29 = arith.constant 0 : index
    %56 = vector.load %arg5[%c0_28, %c0_29] : memref<8x128xf32, #tpu.memory_space<vmem>>, vector<8x128xf32>
    tpu.vector_store %arg5[%c0_28, %c0_29], %55 {strides = array<i32>} : memref<8x128xf32, #tpu.memory_space<vmem>>, vector<8x128xf32>,
    return
  }
  func.func @transform_0(%arg0: i32) -> (i32, i32) {
    %c0_i32 = arith.constant 0 : i32
    %c0_i32_0 = arith.constant 0 : i32
    %c0_i32_1 = arith.constant 0 : i32
    return %c0_i32, %c0_i32_0 : i32, i32
  }
  func.func @transform_1(%arg0: i32) -> (i32, i32) {
    %c0_i32 = arith.constant 0 : i32
    %c0_i32_0 = arith.constant 0 : i32
    %c0_i32_1 = arith.constant 0 : i32
    return %c0_i32, %c0_i32_0 : i32, i32
  }
  func.func @transform_2(%arg0: i32) -> (i32, i32) {
    %c0_i32 = arith.constant 0 : i32
    %c0_i32_0 = arith.constant 0 : i32
    return %arg0, %c0_i32 : i32, i32
  }
  func.func @transform_3(%arg0: i32) -> (i32, i32) {
    %c0_i32 = arith.constant 0 : i32
    %c0_i32_0 = arith.constant 0 : i32
    return %arg0, %c0_i32 : i32, i32
  }
  func.func @transform_4(%arg0: i32) -> (i32, i32) {
    %c0_i32 = arith.constant 0 : i32
    %c0_i32_0 = arith.constant 0 : i32
    return %arg0, %c0_i32 : i32, i32
  }
}

</mosaic_0001>

<bundles_post_ra>
// kernel: ssim_pallas.1
= control target key start
LH: loop header
LB: loop body
LE: loop exit
PB: predicated region body
PF: predicated region fallthrough
CT: control target
= control target key end

     0   :  { %vm112_vm0 = vcmask 130048   ;;  %s464_s1 = inlined_call_operand.vmem [shape: f32[128,128], index: 1, kind: input, shape index: {}]   ;;  %s465_s2 = inlined_call_operand.vmem [shape: f32[16,128], index: 2, kind: input, shape index: {}]   ;;  %s466_s3 = inlined_call_operand.vmem [shape: f32[16,128], index: 3, kind: input, shape index: {}]   ;;  %s467_s0 = inlined_call_operand.vmem [shape: f32[16,16], index: 0, kind: input, shape index: {}]   ;;  %s468_s4 = inlined_call_operand.vmem [shape: f32[8,128], index: 4, kind: output, shape index: {}]  }
   0x1   :  { %v62_v0 = vld [vmem:[%s464_s1 + $0x78] sm:$0xff]  ;;  %v61_v1 = vld [vmem:[%s464_s1 + $0x70] sm:$0xff]  ;;  %v60_v2 = vld [vmem:[%s464_s1 + $0x68] sm:$0xff] }
   0x2   :  { %63 = vmatpush.msra.mxu0 %v62_v0  ;;  %323 = vmatpush.msra.mxu3 %v62_v0  ;;  %v59_v3 = vld [vmem:[%s464_s1 + $0x60] sm:$0xff]  ;;  %v58_v4 = vld [vmem:[%s464_s1 + $0x58] sm:$0xff]  ;;  %v57_v5 = vld [vmem:[%s464_s1 + $0x50] sm:$0xff] }
   0x3   :  { %322 = vmatpush.msra.mxu2 %v62_v0  ;;  %v56_v6 = vld [vmem:[%s464_s1 + $0x48] sm:$0xff]  ;;  %v55_v7 = vld [vmem:[%s464_s1 + $0x40] sm:$0xff]  ;;  %v54_v8 = vld [vmem:[%s464_s1 + $0x38] sm:$0xff] }
   0x4   :  { %64 = vmatpush.msra.mxu0 %v61_v1  ;;  %325 = vmatpush.msra.mxu3 %v61_v1  ;;  %v53_v9 = vld [vmem:[%s464_s1 + $0x30] sm:$0xff]  ;;  %v52_v10 = vld [vmem:[%s464_s1 + $0x28] sm:$0xff]  ;;  %v51_v11 = vld [vmem:[%s464_s1 + $0x20] sm:$0xff] }
   0x5   :  { %324 = vmatpush.msra.mxu2 %v61_v1  ;;  %v50_v12 = vld [vmem:[%s464_s1 + $0x18] sm:$0xff]  ;;  %v49_v13 = vld [vmem:[%s464_s1 + $0x10] sm:$0xff]  ;;  %v18_v14 = vld [vmem:[%s465_s2 + $0x8] sm:$0xff] }
   0x6   :  { %65 = vmatpush.msra.mxu0 %v60_v2  ;;  %327 = vmatpush.msra.mxu3 %v60_v2  ;;  %v48_v15 = vld [vmem:[%s464_s1 + $0x8] sm:$0xff]  ;;  %v47_v16 = vld [vmem:[%s464_s1] sm:$0xff]  ;;  %v26_v17 = vmul.f32 %v18_v14, %v18_v14 }
   0x7   :  { %326 = vmatpush.msra.mxu2 %v60_v2  ;;  %v17_v18 = vld [vmem:[%s465_s2] sm:$0xff]  ;;  %v20_v22 = vld [vmem:[%s466_s3 + $0x8] sm:$0xff] }
   0x8   :  { %66 = vmatpush.msra.mxu0 %v59_v3  ;;  %329 = vmatpush.msra.mxu3 %v59_v3  ;;  %v25_v19 = vmul.f32 %v17_v18, %v17_v18  ;;  %v19_v20 = vld [vmem:[%s466_s3] sm:$0xff]  ;;  %v30_v23 = vmul.f32 %v20_v22, %v20_v22  ;;  %v34_v25 = vmul.f32 %v20_v22, %v18_v14  ;;  %v111_v32 = vld [vmem:[%s467_s0 + $0x8] sm:$0xff] }
   0x9   :  { %328 = vmatpush.msra.mxu2 %v59_v3  ;;  %v29_v21 = vmul.f32 %v19_v20, %v19_v20  ;;  %v33_v24 = vmul.f32 %v19_v20, %v17_v18  ;;  %v110_v29 = vld [vmem:[%s467_s0] sm:$0xff] }
   0xa   :  { %67 = vmatpush.msra.mxu0 %v58_v4  ;;  %331 = vmatpush.msra.mxu3 %v58_v4 }
   0xb   :  { %330 = vmatpush.msra.mxu2 %v58_v4 }
   0xc   :  { %68 = vmatpush.msra.mxu0 %v57_v5  ;;  %333 = vmatpush.msra.mxu3 %v57_v5 }
   0xd   :  { %332 = vmatpush.msra.mxu2 %v57_v5 }
   0xe   :  { %69 = vmatpush.msra.mxu0 %v56_v6  ;;  %335 = vmatpush.msra.mxu3 %v56_v6 }
   0xf   :  { %334 = vmatpush.msra.mxu2 %v56_v6 }
  0x10   :  { %70 = vmatpush.msra.mxu0 %v55_v7  ;;  %337 = vmatpush.msra.mxu3 %v55_v7 }
  0x11   :  { %336 = vmatpush.msra.mxu2 %v55_v7 }
  0x12   :  { %71 = vmatpush.msra.mxu0 %v54_v8  ;;  %339 = vmatpush.msra.mxu3 %v54_v8 }
  0x13   :  { %338 = vmatpush.msra.mxu2 %v54_v8 }
  0x14   :  { %72 = vmatpush.msra.mxu0 %v53_v9  ;;  %341 = vmatpush.msra.mxu3 %v53_v9 }
  0x15   :  { %340 = vmatpush.msra.mxu2 %v53_v9 }
  0x16   :  { %73 = vmatpush.msra.mxu0 %v52_v10  ;;  %343 = vmatpush.msra.mxu3 %v52_v10 }
  0x17   :  { %342 = vmatpush.msra.mxu2 %v52_v10 }
  0x18   :  { %74 = vmatpush.msra.mxu0 %v51_v11  ;;  %345 = vmatpush.msra.mxu3 %v51_v11 }
  0x19   :  { %344 = vmatpush.msra.mxu2 %v51_v11 }
  0x1a   :  { %75 = vmatpush.msra.mxu0 %v50_v12  ;;  %347 = vmatpush.msra.mxu3 %v50_v12 }
  0x1b   :  { %346 = vmatpush.msra.mxu2 %v50_v12 }
  0x1c   :  { %76 = vmatpush.msra.mxu0 %v49_v13  ;;  %349 = vmatpush.msra.mxu3 %v49_v13 }
  0x1d   :  { %348 = vmatpush.msra.mxu2 %v49_v13 }
  0x1e   :  { %77 = vmatpush.msra.mxu0 %v48_v15  ;;  %351 = vmatpush.msra.mxu3 %v48_v15 }
  0x1f   :  { %350 = vmatpush.msra.mxu2 %v48_v15 }
  0x20   :  { %78 = vmatpush.msra.mxu0 %v47_v16  ;;  %353 = vmatpush.msra.mxu3 %v47_v16 }
  0x21   :  { %79 = vmatmul.f32.vlgmr.msra.gmra.mxu0 %v17_v18  ;;  %94 = vmatmul.f32.vlgmr.msra.gmra.mxu3 %v26_v17 }
  0x22   :  { %352 = vmatpush.msra.mxu2 %v47_v16 }
  0x23   :  { %91 = vmatmul.f32.vlgmr.msra.gmra.mxu2 %v25_v19 }
  0x29   :  { %82 = vmatmul.f32.gmra.mxu0 %v18_v14  ;;  %97 = vmatmul.f32.gmra.mxu3 %v29_v21 }
  0x31   :  { %85 = vmatmul.f32.gmra.mxu0 %v19_v20  ;;  %100 = vmatmul.f32.gmra.mxu3 %v30_v23 }
  0x39   :  { %88 = vmatmul.f32.gmra.mxu0 %v20_v22  ;;  %103 = vmatmul.f32.gmra.mxu3 %v33_v24 }
  0x41   :  { %106 = vmatmul.f32.gmra.mxu3 %v34_v25 }
  0x9e   :  { %v80_v26 = vpop.f32.mrf.mxu0 }
  0xa4   :  { %v95_v27 = vpop.f32.mrf.mxu3 }
  0xa6   :  { %v83_v28 = vpop.f32.mrf.mxu0  ;;  %v92_v35 = vpop.f32.mrf.mxu2 }
  0xa7   :  { %133 = vmatpush.msra.mxu1 %v83_v28 }
  0xa9   :  { %134 = vmatpush.msra.mxu1 %v80_v26 }
  0xaa   :  { %312 = vmatmul.msk.f32.vlgmr.msra.gmra.mxu1 %vm112_vm0, %v110_v29 }
  0xac   :  { %v98_v30 = vpop.f32.mrf.mxu3 }
  0xae   :  { %v86_v31 = vpop.f32.mrf.mxu0 }
  0xb2   :  { %313 = vmatmul.msk.f32.gmra.mxu1 %vm112_vm0, %v111_v32 }
  0xb4   :  { %v101_v33 = vpop.f32.mrf.mxu3 }
  0xb6   :  { %v89_v34 = vpop.f32.mrf.mxu0 }
  0xb7   :  { %156 = vmatpush.msrb.mxu1 %v89_v34  ;;  %354 = vmatpush.msrb.mxu2 %v89_v34 }
  0xb9   :  { %157 = vmatpush.msrb.mxu1 %v86_v31  ;;  %355 = vmatpush.msrb.mxu2 %v86_v31 }
  0xba   :  { %314 = vmatmul.msk.f32.vlgmr.msrb.gmra.mxu1 %vm112_vm0, %v110_v29  ;;  %315 = vmatmul.msk.f32.vlgmr.msrb.gmra.mxu2 %vm112_vm0, %v111_v32 }
  0xbb   :  { %179 = vmatpush.msra.mxu1 %v95_v27 }
  0xbc   :  { %v104_v36 = vpop.f32.mrf.mxu3 }
  0xbd   :  { %180 = vmatpush.msra.mxu1 %v92_v35 }
  0xbf   :  { %202 = vmatpush.msrb.mxu1 %v101_v33 }
  0xc1   :  { %203 = vmatpush.msrb.mxu1 %v98_v30 }
  0xc2   :  { %316 = vmatmul.msk.f32.vlgmr.msra.gmra.mxu1 %vm112_vm0, %v110_v29 }
  0xc4   :  { %v107_v37 = vpop.f32.mrf.mxu3 }
  0xc5   :  { %225 = vmatpush.msra.mxu2 %v107_v37 }
  0xc7   :  { %226 = vmatpush.msra.mxu2 %v104_v36 }
  0xc8   :  { %320 = vmatmul.msk.f32.vlgmr.msra.gmra.mxu2 %vm112_vm0, %v110_v29 }
  0xca   :  { %317 = vmatmul.msk.f32.gmra.mxu1 %vm112_vm0, %v111_v32 }
  0xd0   :  { %321 = vmatmul.msk.f32.gmra.mxu2 %vm112_vm0, %v111_v32 }
  0xd2   :  { %318 = vmatmul.msk.f32.vlgmr.msrb.gmra.mxu1 %vm112_vm0, %v110_v29 }
  0xda   :  { %319 = vmatmul.msk.f32.gmra.mxu1 %vm112_vm0, %v111_v32 }
 0x127   :  { %v136_v38 = vpop.f32.mrf.mxu1 }
 0x128   :  { %v234_v44 = vmul.f32 %v136_v38, %v136_v38 }
 0x12f   :  { %v139_v39 = vpop.f32.mrf.mxu1 }
 0x130   :  { %v235_v56 = vmul.f32 %v139_v39, %v139_v39 }
 0x137   :  { %v159_v40 = vpop.f32.mrf.mxu1 }
 0x138   :  { %v236_v43 = vmul.f32 %v159_v40, %v159_v40  ;;  %v238_v4 = vmul.f32 %v159_v40, %v136_v38  ;;  %v303_v40 = vlaneseq }
 0x13a   :  { %v256_v47 = vadd.f32 %v236_v43, %v234_v44  ;;  %v246_v15 = vmul.f32 2.0, %v238_v4 }
 0x13c   :  { %v258_v51 = vadd.f32 0.0001, %v256_v47  ;;  %v248_v26 = vadd.f32 0.0001, %v246_v15 }
 0x13d   :  { %v162_v45 = vpop.f32.mrf.mxu2 }
 0x13e   :  { %v237_v53 = vmul.f32 %v162_v45, %v162_v45  ;;  %v239_v5 = vmul.f32 %v162_v45, %v139_v39 }
 0x13f   :  { %v182_v41 = vpop.f32.mrf.mxu1 }
 0x140   :  { %v240_v48 = vsub.f32 %v182_v41, %v234_v44  ;;  %v257_v58 = vadd.f32 %v237_v53, %v235_v56  ;;  %v247_v17 = vmul.f32 2.0, %v239_v5 }
 0x142   :  { %v259_v62 = vadd.f32 0.0001, %v257_v58  ;;  %v249_v28 = vadd.f32 0.0001, %v247_v17 }
 0x147   :  { %v185_v42 = vpop.f32.mrf.mxu1 }
 0x148   :  { %v241_v59 = vsub.f32 %v185_v42, %v235_v56 }
 0x14b   :  { %v228_v54 = vpop.f32.mrf.mxu2 }
 0x14c   :  { %v244_v7 = vsub.f32 %v228_v54, %v238_v4 }
 0x14e   :  { %v250_v11 = vmul.f32 2.0, %v244_v7 }
 0x14f   :  { %v205_v46 = vpop.f32.mrf.mxu1 }
 0x150   :  { %v242_v49 = vsub.f32 %v205_v46, %v236_v43  ;;  %v252_v20 = vadd.f32 0.0009, %v250_v11  ;;  %v304_v43 = vshrl.u32 %v303_v40, 7 }
 0x152   :  { %v260_v50 = vadd.f32 %v242_v49, %v240_v48  ;;  %v254_v32 = vmul.f32 %v252_v20, %v248_v26  ;;  %vm305_vm9 = vcmp.eq.s32.totalorder %v304_v43, 0 }
 0x153   :  { %v231_v3 = vpop.f32.mrf.mxu2 }
 0x154   :  { %v262_v52 = vadd.f32 0.0009, %v260_v50  ;;  %v245_v8 = vsub.f32 %v231_v3, %v239_v5 }
 0x156   :  { %v264_v55 = vmul.f32 %v262_v52, %v258_v51  ;;  %v251_v12 = vmul.f32 2.0, %v245_v8 }
 0x157   :  { %v208_v57 = vpop.f32.mrf.mxu1 }
 0x158   :  { %356 = vrcp.f32 %v264_v55  ;;  %v243_v60 = vsub.f32 %v208_v57, %v237_v53  ;;  %v277_v16 = vand.u32 2147483648, %v264_v55  ;;  %vm271_vm2 = vweird.f32 %v264_v55 }
 0x159   :  { %v275_v18 = vand.u32 2147483647, %v264_v55  ;;  %v253_v21 = vadd.f32 0.0009, %v251_v12 }
 0x15a   :  { %v261_v61 = vadd.f32 %v243_v60, %v241_v59  ;;  %v278_v27 = vor.u32 1.1754944e-38, %v277_v16 }
 0x15b   :  { %vm276_vm5 = vcmp.eq.f32.partialorder %v275_v18, 8.507059e+37  ;;  %v255_v33 = vmul.f32 %v253_v21, %v249_v28 }
 0x15c   :  { %v263_v63 = vadd.f32 0.0009, %v261_v61 }
 0x15e   :  { %v357_v0 = vpop.eup %356  ;;  %v265_v2 = vmul.f32 %v263_v63, %v259_v62 }
 0x15f   :  { %v267_v1 = vmul.f32 %v357_v0, %v264_v55  ;;  %vm272_vm1 = vweird.f32 %v357_v0 }
 0x160   :  { %358 = vrcp.f32 %v265_v2  ;;  %vm273_vm3 = vmor %vm271_vm2, %vm272_vm1  ;;  %v292_v22 = vand.u32 2147483648, %v265_v2  ;;  %v290_v25 = vand.u32 2147483647, %v265_v2  ;;  %vm286_vm6 = vweird.f32 %v265_v2 }
 0x161   :  { %v268_v6 = vsub.f32 1.0, %v267_v1 }
 0x162   :  { %v293_v31 = vor.u32 1.1754944e-38, %v292_v22  ;;  %vm291_vm8 = vcmp.eq.f32.partialorder %v290_v25, 8.507059e+37 }
 0x163   :  { %v269_v9 = vmul.f32 %v357_v0, %v268_v6 }
 0x165   :  { %v270_v13 = vadd.f32 %v357_v0, %v269_v9 }
 0x166   :  { %v359_v10 = vpop.eup %358 }
 0x167   :  { %v282_v14 = vmul.f32 %v359_v10, %v265_v2  ;;  %v274_v23 = vsel %vm273_vm3, %v357_v0, %v270_v13  ;;  %vm287_vm4 = vweird.f32 %v359_v10 }
 0x168   :  { %v279_v30 = vsel %vm276_vm5, %v278_v27, %v274_v23  ;;  %vm288_vm7 = vmor %vm286_vm6, %vm287_vm4 }
 0x169   :  { %v283_v19 = vsub.f32 1.0, %v282_v14  ;;  %v280_v36 = vmul.f32 %v279_v30, %v254_v32 }
 0x16b   :  { %v284_v24 = vmul.f32 %v359_v10, %v283_v19 }
 0x16d   :  { %v285_v29 = vadd.f32 %v359_v10, %v284_v24 }
 0x16f   :  { %v289_v34 = vsel %vm288_vm7, %v359_v10, %v285_v29 }
 0x170   :  { %v294_v35 = vsel %vm291_vm8, %v293_v31, %v289_v34 }
 0x171   :  { %v295_v37 = vmul.f32 %v294_v35, %v255_v33 }
 0x173   :  { %v296_v38 = vadd.f32 %v295_v37, %v280_v36 }
 0x175   :  { %v297_v39 = vrot.slane %v296_v38, 4 }
 0x177   :  { %v298_v41 = vadd.f32 %v297_v39, %v296_v38 }
 0x179   :  { %v299_v42 = vrot.slane %v298_v41, 2 }
 0x17b   :  { %v300_v44 = vadd.f32 %v299_v42, %v298_v41 }
 0x17d   :  { %v301_v45 = vrot.slane %v300_v44, 1 }
 0x17f   :  { %v302_v46 = vadd.f32 %v301_v45, %v300_v44 }
 0x181   :  { %v306_v47 = vsel %vm305_vm9, %v302_v46, 0.0 }
 0x182   :  { %307 = vst [vmem:[%s468_s4] sm:$0xff] %v306_v47 }

</bundles_post_ra>
